<compile_context>
chip_gen: v7x
topology: tpu7x:2x2x1
jax: 0.10.0
libtpu: 0.0.40
codegen_flags: <defaults>
</compile_context>

<pallas_src>
import math

import jax
import jax.numpy as jnp
from jax.experimental import pallas as pl
from jax.experimental.pallas import tpu as pltpu


def _rezero_kernel(w_ref, x_ref, y_ref, o_ref):
    # w_ref: (1,) f32 scalar in SMEM; x_ref/y_ref/o_ref: VMEM tiles.
    w = w_ref[0]  # keep f32; compute in f32, cast only the final result
    out = x_ref[...].astype(jnp.float32) + y_ref[...].astype(jnp.float32) * w
    o_ref[...] = out.astype(o_ref.dtype)


_COLS_CANDIDATES = (32768, 16384, 8192, 4096, 2048, 1024, 512, 256, 128)


def _round_down(n, m):
    return (n // m) * m


def _vmem_budget():
    """(per-buffer target bytes, vmem_limit_bytes) -- generation aware."""
    cap = None
    try:
        cap = getattr(pltpu.get_tpu_info(), "vmem_capacity_bytes", None)
    except Exception:  # unknown backend / interpret mode
        cap = None
    if cap is not None and cap > (96 << 20):
        # 128 MiB VMEM parts (v5e / v6e): bigger tiles, fewer grid steps.
        return 8 << 20, 96 << 20
    # 64 MiB parts (v7x) or unknown: stay conservative.
    # 3 arrays x 2 buffers x ~4 MiB comfortably fits 48 MiB.
    return 4 << 20, 48 << 20


def _plan(shape, dtype):
    """Pick a lane-dense 2-D view + block + grid for an elementwise op."""
    total = math.prod(shape) if shape else 1
    itemsize = jnp.dtype(dtype).itemsize
    granule = {4: 8, 2: 16, 1: 32}.get(itemsize, 8)
    target_bytes, vmem_limit = _vmem_budget()

    if total % 128 == 0:
        # Lane-dense 2-D view, tile over rows.
        cols = None
        for c in _COLS_CANDIDATES:  # prefer wide, but keep rows >= 2*granule
            if total % c == 0 and total // c >= 2 * granule:
                cols = c
                break
        if cols is None:
            for c in _COLS_CANDIDATES:
                if total % c == 0:
                    cols = c
                    break
        rows = total // cols
        budget_rows = max(granule,
                          _round_down(target_bytes // (cols * itemsize), granule))
        if rows >= 2 * granule:
            # Cap block_rows so the grid has >= 2 steps: lets v7x's two
            # TensorCores split the rows under dimension_semantics="parallel".
            half = max(granule, _round_down(pl.cdiv(rows, 2), granule))
            block_rows = min(budget_rows, half)
        else:
            block_rows = rows  # tiny tensor: single full block (always legal)
        block = (block_rows, cols)
        grid = (pl.cdiv(rows, block_rows),)
        index_map = lambda i: (i, 0)
        view = (rows, cols)
    else:
        # Non-128-divisible total: (1, total) view tiled along the lane axis.
        # Only the final block becomes a masked partial store.
        view = (1, total)
        # A (1, N) VMEM tile is padded to `granule` sublanes -> budget for it.
        budget_cols = max(128,
                          _round_down(target_bytes // (itemsize * granule), 128))
        half = _round_down(pl.cdiv(total, 2), 128)
        block_cols = min(budget_cols, half) if half >= 128 else total
        if block_cols >= total:
            block_cols = total  # single full block (always layout-legal)
        block = (1, block_cols)
        grid = (pl.cdiv(total, block_cols),)
        index_map = lambda i: (0, i)

    return view, block, grid, index_map, vmem_limit


def rezero(x, y, weight):
    """ReZero.forward: x + y * weight (weight is a scalar parameter)."""
    assert x.shape == y.shape, (x.shape, y.shape)
    orig_shape = x.shape
    view, block, grid, index_map, vmem_limit = _plan(x.shape, x.dtype)
    x2 = x.reshape(view)
    y2 = y.reshape(view)
    w = jnp.asarray(weight, dtype=jnp.float32).reshape(1)

    out = pl.pallas_call(
        _rezero_kernel,
        out_shape=jax.ShapeDtypeStruct(view, x.dtype),
        grid_spec=pltpu.PrefetchScalarGridSpec(
            num_scalar_prefetch=0,
            grid=grid,
            in_specs=[
                pl.BlockSpec(memory_space=pltpu.MemorySpace.SMEM),  # scalar weight
                pl.BlockSpec(block, index_map),                     # x tile
                pl.BlockSpec(block, index_map),                     # y tile
            ],
            out_specs=pl.BlockSpec(block, index_map),
        ),
        compiler_params=pltpu.CompilerParams(
            dimension_semantics=("parallel",),
            vmem_limit_bytes=vmem_limit,
        ),
    )(w, x2, y2)

    return out.reshape(orig_shape)


def _reference(x, y, weight):
    return x + y * weight


if __name__ == "__main__":
    key = jax.random.PRNGKey(0)
    k1, k2, k3, k4 = jax.random.split(key, 4)

    # Primary shape (batch=2, seq=8, hidden=32) -- lane-dense path.
    B, S, H = 2, 8, 32
    x = jax.random.normal(k1, (B, S, H), dtype=jnp.float32)
    y = jax.random.normal(k2, (B, S, H), dtype=jnp.float32)

    # ReZero init: weights = fill (default 0.0).
    w_init = jnp.float32(0.0)
    out = jax.block_until_ready(rezero(x, y, w_init))
    assert out.shape == x.shape and out.dtype == x.dtype
    assert jnp.allclose(out, _reference(x, y, w_init), atol=1e-6, rtol=1e-6), "mismatch (w=0)"

    # Non-trivial (post-training) weight value.
    w_trained = jnp.float32(0.37)
    out2 = jax.block_until_ready(rezero(x, y, w_trained))
    assert jnp.allclose(out2, _reference(x, y, w_trained), atol=1e-6, rtol=1e-6), "mismatch (w=0.37)"

    # Odd hidden size -> exercises the non-128-divisible (1, total) fallback,
    # where only the final block is a masked partial store.
    xo = jax.random.normal(k3, (2, 8, 25), dtype=jnp.float32)
    yo = jax.random.normal(k4, (2, 8, 25), dtype=jnp.float32)
    out3 = jax.block_until_ready(rezero(xo, yo, w_trained))
    assert out3.shape == xo.shape and out3.dtype == xo.dtype
    assert jnp.allclose(out3, _reference(xo, yo, w_trained), atol=1e-6, rtol=1e-6), "mismatch (ragged)"

    print("KERNEL_OK")
</pallas_src>

<mosaic_0001>
module attributes {stable_mosaic.version = 11 : i64} {
  func.func @_rezero_kernel(%arg0: i32, %arg1: memref<1xf32, #tpu.memory_space<smem>>, %arg2: memref<1x512xf32, #tpu.memory_space<vmem>>, %arg3: memref<1x512xf32, #tpu.memory_space<vmem>>, %arg4: memref<1x512xf32, #tpu.memory_space<vmem>>) attributes {dimension_semantics = [#tpu.dimension_semantics<parallel>], iteration_bounds = array<i64: 1>, scalar_prefetch = 0 : i64, scratch_operands = 0 : i64, tpu.core_type = #tpu.core_type<tc>, window_params = [{transform_indices = @transform_0, window_bounds = array<i64: 1>}, {transform_indices = @transform_1, window_bounds = array<i64: 1, 512>}, {transform_indices = @transform_2, window_bounds = array<i64: 1, 512>}, {transform_indices = @transform_3, window_bounds = array<i64: 1, 512>}]} {
    %c0 = arith.constant 0 : index
    %0 = memref.load %arg1[%c0] : memref<1xf32, #tpu.memory_space<smem>>
    %c0_0 = arith.constant 0 : index
    %c0_1 = arith.constant 0 : index
    %1 = vector.load %arg2[%c0_0, %c0_1] : memref<1x512xf32, #tpu.memory_space<vmem>>, vector<1x512xf32>
    %c0_2 = arith.constant 0 : index
    %c0_3 = arith.constant 0 : index
    %2 = vector.load %arg3[%c0_2, %c0_3] : memref<1x512xf32, #tpu.memory_space<vmem>>, vector<1x512xf32>
    %3 = vector.broadcast %0 : f32 to vector<1x512xf32>
    %4 = arith.mulf %2, %3 : vector<1x512xf32>
    %5 = arith.addf %1, %4 : vector<1x512xf32>
    %c0_4 = arith.constant 0 : index
    %c0_5 = arith.constant 0 : index
    %6 = vector.load %arg4[%c0_4, %c0_5] : memref<1x512xf32, #tpu.memory_space<vmem>>, vector<1x512xf32>
    tpu.vector_store %arg4[%c0_4, %c0_5], %5 {strides = array<i32>} : memref<1x512xf32, #tpu.memory_space<vmem>>, vector<1x512xf32>,
    return
  }
  func.func @transform_0(%arg0: i32) -> i32 {
    %c0_i32 = arith.constant 0 : i32
    %c0_i32_0 = arith.constant 0 : i32
    return %c0_i32 : i32
  }
  func.func @transform_1(%arg0: i32) -> (i32, i32) {
    %c0_i32 = arith.constant 0 : i32
    %c0_i32_0 = arith.constant 0 : i32
    return %arg0, %c0_i32 : i32, i32
  }
  func.func @transform_2(%arg0: i32) -> (i32, i32) {
    %c0_i32 = arith.constant 0 : i32
    %c0_i32_0 = arith.constant 0 : i32
    return %arg0, %c0_i32 : i32, i32
  }
  func.func @transform_3(%arg0: i32) -> (i32, i32) {
    %c0_i32 = arith.constant 0 : i32
    %c0_i32_0 = arith.constant 0 : i32
    return %arg0, %c0_i32 : i32, i32
  }
}

</mosaic_0001>

<bundles_post_ra>
// kernel: tpu_custom_call.1
= control target key start
LH: loop header
LB: loop body
LE: loop exit
PB: predicated region body
PF: predicated region fallthrough
CT: control target
= control target key end

     0   :  { %9 = vsyncpa [#allocation4], 0  ;;  %s156_s0 = inlined_call_operand.<no memory space> [shape: f32[1], index: 0, kind: input, shape index: {}]   ;;  %s157_s1 = inlined_call_operand.hbm [shape: f32[1,512], index: 1, kind: input, shape index: {}]   ;;  %s158_s2 = inlined_call_operand.vmem [shape: f32[1,512], index: 2, kind: input, shape index: {}]   ;;  %s159_s3 = inlined_call_operand.hbm [shape: f32[1,512], index: 3, kind: output, shape index: {}]  }
   0x1   :  { %10 = vsyncpa [#allocation5], 0  ;;  %s104_s12 = smov [#allocation3]   ;;  %s56_s16 = scalar_lea.hbm %s157_s1, 64 }
   0x2   :  { %s19_s13 = sshll.u32 %s104_s12, 4  ;;  %p57_p0 = scmp.ne.s32.totalorder %s157_s1, %s56_s16  ;;  %s20_s13 = int_to_ptr.vmem [resolvable:$true] %s19_s13 }
   0x3   :  { %p60_p1 = scmp.lt.u32.totalorder %s56_s16, %s157_s1 }
   0x5   :  { %p62_p2 = pnand %p60_p1, %p57_p0 }
   0x7   :  { %65 = shalt.err (!%p62_p2)
}
   0x8   :  { %s66_s21 = scalar_lea.vmem %s20_s13, 64  ;;  %p71_p4 = scmp.lt.s32.totalorder %s20_s13, %s20_s13 }
   0x9   :  { %p67_p3 = scmp.ne.s32.totalorder %s20_s13, %s66_s21  ;;  %p72_p5 = scmp.lt.s32.totalorder %s66_s21, %s66_s21 }
   0xb   :  { %p73_p6 = por %p72_p5, %p71_p4 }
   0xd   :  { %p74_p7 = pnand %p73_p6, %p67_p3 }
   0xf   :  { %77 = shalt.err (!%p74_p7)
}
  0x10   :  { %22 = dma.hbm_to_vmem [thread:$0]  %s157_s1, 64, %s20_s13, [#allocation4]  }
  0x11   :  { %100 = dma.done.wait [#allocation4], 64  }
  0x12   :  { %101 = vsyncadd [#allocation4], 4294967232  ;;  %v31_v0 = vstv %s156_s0  ;;  %v34_v1 = vlaneseq  ;;  %v29_v2 = vld [vmem:[#allocation3] sm:$0xf]  ;;  %s105_s28 = smov [#allocation6]  }
  0x13   :  { %v30_v3 = vld [vmem:[%s158_s2] sm:$0xf]  ;;  %s45_s29 = sshll.u32 %s105_s28, 4  ;;  %s46_s29 = int_to_ptr.vmem [resolvable:$true] %s45_s29 }
  0x14   :  { %v32_v4 = vmul.f32 %v31_v0, %v30_v3  ;;  %vm36_vm0 = vcmp.lt.s32.totalorder %v34_v1, 512  ;;  %s78_s1 = scalar_lea.vmem %s46_s29, 64  ;;  %p83_p9 = scmp.lt.s32.totalorder %s46_s29, %s46_s29 }
  0x15   :  { %p79_p8 = scmp.ne.s32.totalorder %s46_s29, %s78_s1  ;;  %p84_p10 = scmp.lt.s32.totalorder %s78_s1, %s78_s1 }
  0x16   :  { %v33_v5 = vadd.f32 %v32_v4, %v29_v2 }
  0x17   :  { %p85_p11 = por %p84_p10, %p83_p9 }
  0x18   :  { %38 = vst.msk [vmem:[#allocation6] sm:$0xf] %vm36_vm0, %v33_v5 }
  0x19   :  { %p86_p12 = pnand %p85_p11, %p79_p8 }
  0x1b   :  { %89 = shalt.err (!%p86_p12)
}
  0x1c   :  { %s90_s4 = scalar_lea.hbm %s159_s3, 64 }
  0x1d   :  { %p91_p13 = scmp.ne.s32.totalorder %s159_s3, %s90_s4  ;;  %p94_p0 = scmp.lt.u32.totalorder %s90_s4, %s159_s3 }
  0x1f   :  { %p96_p1 = pnand %p94_p0, %p91_p13 }
  0x21   :  { %99 = shalt.err (!%p96_p1)
}
  0x22   :  { %48 = dma.vmem_to_hbm [thread:$0]  %s46_s29, 64, %s159_s3, [#allocation5]  }
  0x23   :  { %102 = dma.done.wait [#allocation5], 64  }
  0x24   :  { %103 = vsyncadd [#allocation5], 4294967232 }
  0x25   :  { %52 = vsyncpa [#allocation4], 1 }
  0x26   :  { %53 = vsyncpa [#allocation5], 1 }

</bundles_post_ra>
